<compile_context>
chip_gen: v6e
topology: v6e:2x2x1
jax: 0.10.0
libtpu: 0.0.40
codegen_flags: <defaults>
</compile_context>

<pallas_src>
import functools

import jax
import jax.numpy as jnp
from jax.experimental import pallas as pl
from jax.experimental.pallas import tpu as pltpu


def _mlp_kernel(x_ref, w0_ref, b0_ref, w1_ref, b1_ref,
                wp_ref, bp_ref, wb_ref, bb_ref,
                logits_ref, base_ref, act_ref, *, num_actions):
    # In-kernel cast: x arrives f32 from HBM (single read), bf16 for the MXU.
    x = x_ref[...].astype(w0_ref.dtype)                        # (tile_n, F)

    # fc_0 + relu
    h = jnp.dot(x, w0_ref[...], preferred_element_type=jnp.float32) + b0_ref[...]
    h = jnp.maximum(h, 0.0).astype(w1_ref.dtype)               # (tile_n, H)

    # fc_1 + relu
    h = jnp.dot(h, w1_ref[...], preferred_element_type=jnp.float32) + b1_ref[...]
    h = jnp.maximum(h, 0.0).astype(wp_ref.dtype)               # (tile_n, H)

    # Policy head (f32 accumulation, f32 output).
    logits = jnp.dot(h, wp_ref[...], preferred_element_type=jnp.float32) + bp_ref[...]
    # Baseline head.
    baseline = jnp.dot(h, wb_ref[...], preferred_element_type=jnp.float32) + bb_ref[...]

    # Eval-mode action: argmax over logits, first index among ties, int32.
    lane = jax.lax.broadcasted_iota(jnp.int32, logits.shape, 1)
    max_val = jnp.max(logits, axis=1, keepdims=True)
    cand = jnp.where(logits == max_val, lane, num_actions)
    action = jnp.min(cand, axis=1, keepdims=True)               # (tile_n, 1) i32

    logits_ref[...] = logits
    base_ref[...] = baseline
    act_ref[...] = action


def _round_up(a, b):
    return (a + b - 1) // b * b


def _choose_tile_n(n, tile_n_max):
    t = min(tile_n_max, _round_up(n, 8))
    # For large N, keep >= 4 grid steps so both TensorCores on v7x get work
    # and the DMA pipeline has something to overlap.
    if n >= 2048:
        t = min(t, _round_up(pl.cdiv(n, 4), 8))
    return max(t, 8)


def pack_params(params):
    """One-time prep (do NOT call per forward): bf16 weights, f32 biases."""
    return dict(
        w0=params["w0"].astype(jnp.bfloat16),
        b0=params["b0"].astype(jnp.float32),
        w1=params["w1"].astype(jnp.bfloat16),
        b1=params["b1"].astype(jnp.float32),
        wp=params["wp"].astype(jnp.bfloat16),
        bp=params["bp"].astype(jnp.float32),
        wb=params["wb"].astype(jnp.bfloat16),
        bb=params["bb"].astype(jnp.float32),
    )


def instance_specific_net_forward(x, packed_params, *, tile_n_max=8192):
    """x: (T, B, state_dim) float32. Returns dict(policy_logits, baseline, action)."""
    T, B, F = x.shape
    N = T * B
    H = packed_params["w0"].shape[1]
    A = packed_params["wp"].shape[1]

    x_flat = x.reshape(N, F)                       # no pad, no dtype cast here
    tile_n = _choose_tile_n(N, tile_n_max)
    grid = (pl.cdiv(N, tile_n),)

    flops = 2 * N * (F * H + H * H + H * (A + 1))
    bytes_accessed = (
        N * F * 4                                  # x read (f32)
        + N * (A * 4 + 4 + 4)                      # logits + baseline + action
        + (F * H + H * H + H * A + H) * 2          # bf16 weights (resident)
        + (H + H + A + 1) * 4                      # f32 biases
    )

    kernel = functools.partial(_mlp_kernel, num_actions=A)

    resident = lambda i: (0, 0)                    # weights/biases stay in VMEM

    logits, baseline, action = pl.pallas_call(
        kernel,
        out_shape=(
            jax.ShapeDtypeStruct((N, A), jnp.float32),
            jax.ShapeDtypeStruct((N, 1), jnp.float32),
            jax.ShapeDtypeStruct((N, 1), jnp.int32),
        ),
        grid_spec=pltpu.PrefetchScalarGridSpec(
            num_scalar_prefetch=0,
            grid=grid,
            in_specs=[
                pl.BlockSpec((tile_n, F), lambda i: (i, 0)),   # x tile (f32)
                pl.BlockSpec((F, H), resident),                # w0
                pl.BlockSpec((1, H), resident),                # b0
                pl.BlockSpec((H, H), resident),                # w1
                pl.BlockSpec((1, H), resident),                # b1
                pl.BlockSpec((H, A), resident),                # wp
                pl.BlockSpec((1, A), resident),                # bp
                pl.BlockSpec((H, 1), resident),                # wb
                pl.BlockSpec((1, 1), resident),                # bb
            ],
            out_specs=[
                pl.BlockSpec((tile_n, A), lambda i: (i, 0)),   # policy logits
                pl.BlockSpec((tile_n, 1), lambda i: (i, 0)),   # baseline
                pl.BlockSpec((tile_n, 1), lambda i: (i, 0)),   # action (i32)
            ],
        ),
        compiler_params=pltpu.CompilerParams(
            dimension_semantics=("parallel",),
        ),
        cost_estimate=pl.CostEstimate(
            flops=flops, transcendentals=0, bytes_accessed=bytes_accessed),
    )(x_flat,
      packed_params["w0"], packed_params["b0"],
      packed_params["w1"], packed_params["b1"],
      packed_params["wp"], packed_params["bp"],
      packed_params["wb"], packed_params["bb"])

    return dict(
        policy_logits=logits.reshape(T, B, A),
        baseline=baseline.reshape(T, B),
        action=action.reshape(T, B),
    )


def init_params(key, state_dim, state_hidden, num_actions):
    """Deterministic synthetic parameters with nn.Linear-like fan-in scaling.

    Weights are stored as (in, out) so the kernel does x @ W + b (equivalent to
    PyTorch's x @ W.T with W of shape (out, in))."""
    ks = jax.random.split(key, 8)

    def lin(kw, kb, fan_in, fan_out):
        bound = 1.0 / jnp.sqrt(fan_in)
        w = jax.random.uniform(kw, (fan_in, fan_out), jnp.float32, -bound, bound)
        b = jax.random.uniform(kb, (1, fan_out), jnp.float32, -bound, bound)
        return w, b

    w0, b0 = lin(ks[0], ks[1], state_dim, state_hidden)
    w1, b1 = lin(ks[2], ks[3], state_hidden, state_hidden)
    wp, bp = lin(ks[4], ks[5], state_hidden, num_actions)
    wb, bb = lin(ks[6], ks[7], state_hidden, 1)
    return dict(w0=w0, b0=b0, w1=w1, b1=b1, wp=wp, bp=bp, wb=wb, bb=bb)


if __name__ == "__main__":
    # Small shapes consistent with the module: src_features is (T, B, state_dim).
    T, B = 2, 4
    STATE_DIM = 16
    STATE_HIDDEN = 128
    NUM_ACTIONS = 8

    key = jax.random.PRNGKey(0)
    k_x, k_p = jax.random.split(key)

    x = jax.random.normal(k_x, (T, B, STATE_DIM), dtype=jnp.float32)
    params = init_params(k_p, STATE_DIM, STATE_HIDDEN, NUM_ACTIONS)
    packed_params = pack_params(params)          # one-time weight prep (bf16)

    out = instance_specific_net_forward(x, packed_params)
    jax.block_until_ready(out)

    assert out["policy_logits"].shape == (T, B, NUM_ACTIONS)
    assert out["policy_logits"].dtype == jnp.float32
    assert out["baseline"].shape == (T, B)
    assert out["action"].shape == (T, B)
    assert out["action"].dtype == jnp.int32

    # Cross-check against a pure-JAX f32 reference of the same math.
    # (Kernel runs bf16 matmuls with f32 accumulation, so tolerances are loose.)
    xf = x.reshape(T * B, STATE_DIM)
    h = jnp.maximum(xf @ params["w0"] + params["b0"], 0.0)
    h = jnp.maximum(h @ params["w1"] + params["b1"], 0.0)
    ref_logits = h @ params["wp"] + params["bp"]
    ref_baseline = (h @ params["wb"] + params["bb"]).reshape(T, B)

    got_logits = out["policy_logits"].reshape(T * B, NUM_ACTIONS)
    assert jnp.allclose(got_logits, ref_logits, atol=5e-2, rtol=5e-2)
    assert jnp.allclose(out["baseline"], ref_baseline, atol=5e-2, rtol=5e-2)

    # Action must be exactly the argmax of the logits the kernel itself produced.
    self_consistent_action = jnp.argmax(got_logits, axis=1).reshape(T, B).astype(jnp.int32)
    assert jnp.array_equal(out["action"], self_consistent_action)
    # And (barring bf16-induced near-ties) it matches the f32 reference argmax.
    ref_action = jnp.argmax(ref_logits, axis=1).reshape(T, B).astype(jnp.int32)
    assert jnp.array_equal(out["action"], ref_action)

    print("KERNEL_OK")
</pallas_src>

<mosaic_0001>
module attributes {stable_mosaic.version = 11 : i64} {
  func.func @_mlp_kernel(%arg0: i32, %arg1: memref<8x16xf32, #tpu.memory_space<vmem>>, %arg2: memref<16x128xbf16, #tpu.memory_space<vmem>>, %arg3: memref<1x128xf32, #tpu.memory_space<vmem>>, %arg4: memref<128x128xbf16, #tpu.memory_space<vmem>>, %arg5: memref<1x128xf32, #tpu.memory_space<vmem>>, %arg6: memref<128x8xbf16, #tpu.memory_space<vmem>>, %arg7: memref<1x8xf32, #tpu.memory_space<vmem>>, %arg8: memref<128x1xbf16, #tpu.memory_space<vmem>>, %arg9: memref<1x1xf32, #tpu.memory_space<vmem>>, %arg10: memref<8x8xf32, #tpu.memory_space<vmem>>, %arg11: memref<8x1xf32, #tpu.memory_space<vmem>>, %arg12: memref<8x1xi32, #tpu.memory_space<vmem>>) attributes {dimension_semantics = [#tpu.dimension_semantics<parallel>], iteration_bounds = array<i64: 1>, scalar_prefetch = 0 : i64, scratch_operands = 0 : i64, tpu.core_type = #tpu.core_type<tc>, window_params = [{transform_indices = @transform_0, window_bounds = array<i64: 8, 16>}, {pipeline_mode = #tpu.pipeline_mode<synchronous>, transform_indices = @transform_1, window_bounds = array<i64: 16, 128>}, {pipeline_mode = #tpu.pipeline_mode<synchronous>, transform_indices = @transform_2, window_bounds = array<i64: 1, 128>}, {pipeline_mode = #tpu.pipeline_mode<synchronous>, transform_indices = @transform_3, window_bounds = array<i64: 128, 128>}, {pipeline_mode = #tpu.pipeline_mode<synchronous>, transform_indices = @transform_4, window_bounds = array<i64: 1, 128>}, {pipeline_mode = #tpu.pipeline_mode<synchronous>, transform_indices = @transform_5, window_bounds = array<i64: 128, 8>}, {pipeline_mode = #tpu.pipeline_mode<synchronous>, transform_indices = @transform_6, window_bounds = array<i64: 1, 8>}, {pipeline_mode = #tpu.pipeline_mode<synchronous>, transform_indices = @transform_7, window_bounds = array<i64: 128, 1>}, {pipeline_mode = #tpu.pipeline_mode<synchronous>, transform_indices = @transform_8, window_bounds = array<i64: 1, 1>}, {transform_indices = @transform_9, window_bounds = array<i64: 8, 8>}, {transform_indices = @transform_10, window_bounds = array<i64: 8, 1>}, {transform_indices = @transform_11, window_bounds = array<i64: 8, 1>}]} {
    %c0 = arith.constant 0 : index
    %c0_0 = arith.constant 0 : index
    %0 = vector.load %arg1[%c0, %c0_0] : memref<8x16xf32, #tpu.memory_space<vmem>>, vector<8x16xf32>
    %1 = arith.truncf %0 : vector<8x16xf32> to vector<8x16xbf16>
    %c0_1 = arith.constant 0 : index
    %c0_2 = arith.constant 0 : index
    %2 = vector.load %arg2[%c0_1, %c0_2] : memref<16x128xbf16, #tpu.memory_space<vmem>>, vector<16x128xbf16>
    %cst = arith.constant dense<0.000000e+00> : vector<8x128xf32>
    %3 = tpu.matmul %1, %2, %cst {dimension_numbers = #tpu.dot_dimension_numbers<[1], [0], [0], [1], [0, 0, 1, 1], [], []>} : vector<8x16xbf16>, vector<16x128xbf16>, vector<8x128xf32> -> vector<8x128xf32>
    %c0_3 = arith.constant 0 : index
    %c0_4 = arith.constant 0 : index
    %4 = vector.load %arg3[%c0_3, %c0_4] : memref<1x128xf32, #tpu.memory_space<vmem>>, vector<1x128xf32>
    %5 = vector.broadcast %4 : vector<1x128xf32> to vector<8x128xf32>
    %6 = arith.addf %3, %5 : vector<8x128xf32>
    %cst_5 = arith.constant 0.000000e+00 : f32
    %7 = vector.broadcast %cst_5 : f32 to vector<8x128xf32>
    %8 = arith.maximumf %6, %7 : vector<8x128xf32>
    %9 = arith.truncf %8 : vector<8x128xf32> to vector<8x128xbf16>
    %c0_6 = arith.constant 0 : index
    %c0_7 = arith.constant 0 : index
    %10 = vector.load %arg4[%c0_6, %c0_7] : memref<128x128xbf16, #tpu.memory_space<vmem>>, vector<128x128xbf16>
    %cst_8 = arith.constant dense<0.000000e+00> : vector<8x128xf32>
    %11 = tpu.matmul %9, %10, %cst_8 {dimension_numbers = #tpu.dot_dimension_numbers<[1], [0], [0], [1], [0, 0, 1, 1], [], []>} : vector<8x128xbf16>, vector<128x128xbf16>, vector<8x128xf32> -> vector<8x128xf32>
    %c0_9 = arith.constant 0 : index
    %c0_10 = arith.constant 0 : index
    %12 = vector.load %arg5[%c0_9, %c0_10] : memref<1x128xf32, #tpu.memory_space<vmem>>, vector<1x128xf32>
    %13 = vector.broadcast %12 : vector<1x128xf32> to vector<8x128xf32>
    %14 = arith.addf %11, %13 : vector<8x128xf32>
    %cst_11 = arith.constant 0.000000e+00 : f32
    %15 = vector.broadcast %cst_11 : f32 to vector<8x128xf32>
    %16 = arith.maximumf %14, %15 : vector<8x128xf32>
    %17 = arith.truncf %16 : vector<8x128xf32> to vector<8x128xbf16>
    %c0_12 = arith.constant 0 : index
    %c0_13 = arith.constant 0 : index
    %18 = vector.load %arg6[%c0_12, %c0_13] : memref<128x8xbf16, #tpu.memory_space<vmem>>, vector<128x8xbf16>
    %cst_14 = arith.constant dense<0.000000e+00> : vector<8x8xf32>
    %19 = tpu.matmul %17, %18, %cst_14 {dimension_numbers = #tpu.dot_dimension_numbers<[1], [0], [0], [1], [0, 0, 1, 1], [], []>} : vector<8x128xbf16>, vector<128x8xbf16>, vector<8x8xf32> -> vector<8x8xf32>
    %c0_15 = arith.constant 0 : index
    %c0_16 = arith.constant 0 : index
    %20 = vector.load %arg7[%c0_15, %c0_16] : memref<1x8xf32, #tpu.memory_space<vmem>>, vector<1x8xf32>
    %21 = vector.broadcast %20 : vector<1x8xf32> to vector<8x8xf32>
    %22 = arith.addf %19, %21 : vector<8x8xf32>
    %c0_17 = arith.constant 0 : index
    %c0_18 = arith.constant 0 : index
    %23 = vector.load %arg8[%c0_17, %c0_18] : memref<128x1xbf16, #tpu.memory_space<vmem>>, vector<128x1xbf16>
    %cst_19 = arith.constant dense<0.000000e+00> : vector<8x1xf32>
    %24 = tpu.matmul %17, %23, %cst_19 {dimension_numbers = #tpu.dot_dimension_numbers<[1], [0], [0], [1], [0, 0, 1, 1], [], []>} : vector<8x128xbf16>, vector<128x1xbf16>, vector<8x1xf32> -> vector<8x1xf32>
    %c0_20 = arith.constant 0 : index
    %c0_21 = arith.constant 0 : index
    %25 = vector.load %arg9[%c0_20, %c0_21] : memref<1x1xf32, #tpu.memory_space<vmem>>, vector<1x1xf32>
    %26 = vector.broadcast %25 : vector<1x1xf32> to vector<8x1xf32>
    %27 = arith.addf %24, %26 : vector<8x1xf32>
    %28 = tpu.iota {dimensions = array<i32: 1>} : vector<8x8xi32>
    %cst_22 = arith.constant dense<0xFF800000> : vector<8xf32>
    %29 = vector.multi_reduction <maximumf>, %22, %cst_22 [1] : vector<8x8xf32> to vector<8xf32>
    %30 = vector.shape_cast %29 : vector<8xf32> to vector<8x1xf32>
    %31 = vector.broadcast %30 : vector<8x1xf32> to vector<8x8xf32>
    %32 = arith.cmpf oeq, %22, %31 : vector<8x8xf32>
    %c8_i32 = arith.constant 8 : i32
    %33 = vector.broadcast %c8_i32 : i32 to vector<8x8xi32>
    %34 = arith.select %32, %28, %33 : vector<8x8xi1>, vector<8x8xi32>
    %cst_23 = arith.constant dense<2147483647> : vector<8xi32>
    %35 = vector.multi_reduction <minsi>, %34, %cst_23 [1] : vector<8x8xi32> to vector<8xi32>
    %36 = vector.shape_cast %35 : vector<8xi32> to vector<8x1xi32>
    %c0_24 = arith.constant 0 : index
    %c0_25 = arith.constant 0 : index
    %37 = vector.load %arg10[%c0_24, %c0_25] : memref<8x8xf32, #tpu.memory_space<vmem>>, vector<8x8xf32>
    tpu.vector_store %arg10[%c0_24, %c0_25], %22 {strides = array<i32>} : memref<8x8xf32, #tpu.memory_space<vmem>>, vector<8x8xf32>,
    %c0_26 = arith.constant 0 : index
    %c0_27 = arith.constant 0 : index
    %38 = vector.load %arg11[%c0_26, %c0_27] : memref<8x1xf32, #tpu.memory_space<vmem>>, vector<8x1xf32>
    tpu.vector_store %arg11[%c0_26, %c0_27], %27 {strides = array<i32>} : memref<8x1xf32, #tpu.memory_space<vmem>>, vector<8x1xf32>,
    %c0_28 = arith.constant 0 : index
    %c0_29 = arith.constant 0 : index
    %39 = vector.load %arg12[%c0_28, %c0_29] : memref<8x1xi32, #tpu.memory_space<vmem>>, vector<8x1xi32>
    tpu.vector_store %arg12[%c0_28, %c0_29], %36 {strides = array<i32>} : memref<8x1xi32, #tpu.memory_space<vmem>>, vector<8x1xi32>,
    return
  }
  func.func @transform_0(%arg0: i32) -> (i32, i32) {
    %c0_i32 = arith.constant 0 : i32
    %c0_i32_0 = arith.constant 0 : i32
    return %arg0, %c0_i32 : i32, i32
  }
  func.func @transform_1(%arg0: i32) -> (i32, i32) {
    %c0_i32 = arith.constant 0 : i32
    %c0_i32_0 = arith.constant 0 : i32
    %c0_i32_1 = arith.constant 0 : i32
    return %c0_i32, %c0_i32_0 : i32, i32
  }
  func.func @transform_2(%arg0: i32) -> (i32, i32) {
    %c0_i32 = arith.constant 0 : i32
    %c0_i32_0 = arith.constant 0 : i32
    %c0_i32_1 = arith.constant 0 : i32
    return %c0_i32, %c0_i32_0 : i32, i32
  }
  func.func @transform_3(%arg0: i32) -> (i32, i32) {
    %c0_i32 = arith.constant 0 : i32
    %c0_i32_0 = arith.constant 0 : i32
    %c0_i32_1 = arith.constant 0 : i32
    return %c0_i32, %c0_i32_0 : i32, i32
  }
  func.func @transform_4(%arg0: i32) -> (i32, i32) {
    %c0_i32 = arith.constant 0 : i32
    %c0_i32_0 = arith.constant 0 : i32
    %c0_i32_1 = arith.constant 0 : i32
    return %c0_i32, %c0_i32_0 : i32, i32
  }
  func.func @transform_5(%arg0: i32) -> (i32, i32) {
    %c0_i32 = arith.constant 0 : i32
    %c0_i32_0 = arith.constant 0 : i32
    %c0_i32_1 = arith.constant 0 : i32
    return %c0_i32, %c0_i32_0 : i32, i32
  }
  func.func @transform_6(%arg0: i32) -> (i32, i32) {
    %c0_i32 = arith.constant 0 : i32
    %c0_i32_0 = arith.constant 0 : i32
    %c0_i32_1 = arith.constant 0 : i32
    return %c0_i32, %c0_i32_0 : i32, i32
  }
  func.func @transform_7(%arg0: i32) -> (i32, i32) {
    %c0_i32 = arith.constant 0 : i32
    %c0_i32_0 = arith.constant 0 : i32
    %c0_i32_1 = arith.constant 0 : i32
    return %c0_i32, %c0_i32_0 : i32, i32
  }
  func.func @transform_8(%arg0: i32) -> (i32, i32) {
    %c0_i32 = arith.constant 0 : i32
    %c0_i32_0 = arith.constant 0 : i32
    %c0_i32_1 = arith.constant 0 : i32
    return %c0_i32, %c0_i32_0 : i32, i32
  }
  func.func @transform_9(%arg0: i32) -> (i32, i32) {
    %c0_i32 = arith.constant 0 : i32
    %c0_i32_0 = arith.constant 0 : i32
    return %arg0, %c0_i32 : i32, i32
  }
  func.func @transform_10(%arg0: i32) -> (i32, i32) {
    %c0_i32 = arith.constant 0 : i32
    %c0_i32_0 = arith.constant 0 : i32
    return %arg0, %c0_i32 : i32, i32
  }
  func.func @transform_11(%arg0: i32) -> (i32, i32) {
    %c0_i32 = arith.constant 0 : i32
    %c0_i32_0 = arith.constant 0 : i32
    return %arg0, %c0_i32 : i32, i32
  }
}

</mosaic_0001>

<bundles_post_ra>
// kernel: tpu_custom_call.1
= control target key start
LH: loop header
LB: loop body
LE: loop exit
PB: predicated region body
PF: predicated region fallthrough
CT: control target
= control target key end

     0   :  { %s861_s0 = inlined_call_operand.vmem [shape: f32[8,16], index: 0, kind: input, shape index: {}]   ;;  %s862_s1 = inlined_call_operand.vmem [shape: bf16[16,128], index: 1, kind: input, shape index: {}]   ;;  %s863_s2 = inlined_call_operand.vmem [shape: f32[1,128], index: 2, kind: input, shape index: {}]   ;;  %s864_s3 = inlined_call_operand.vmem [shape: bf16[128,128], index: 3, kind: input, shape index: {}]   ;;  %s865_s4 = inlined_call_operand.vmem [shape: f32[1,128], index: 4, kind: input, shape index: {}]   ;;  %s866_s5 = inlined_call_operand.vmem [shape: bf16[128,8], index: 5, kind: input, shape index: {}]   ;;  %s867_s6 = inlined_call_operand.vmem [shape: f32[1,8], index: 6, kind: input, shape index: {}]   ;;  %s868_s7 = inlined_call_operand.vmem [shape: bf16[128,1], index: 7, kind: input, shape index: {}]   ;;  %s869_s8 = inlined_call_operand.<no memory space> [shape: f32[1,1], index: 8, kind: input, shape index: {}]   ;;  %s870_s9 = inlined_call_operand.hbm [shape: f32[8,8], index: 9, kind: output, shape index: {0}]   ;;  %s871_s10 = inlined_call_operand.vmem [shape: f32[8,1], index: 10, kind: output, shape index: {1}]   ;;  %s872_s11 = inlined_call_operand.vmem [shape: s32[8,1], index: 11, kind: output, shape index: {2}]  }
   0x1   :  { %v17_v0 = vstv %s869_s8 }
   0x2   :  { %18 = vst [vmem:[#allocation2] sm:$0x1] %v17_v0 }
   0x3   :  { %v614_v1 = vld [vmem:[%s862_s1] sm:$0xff]   ;;  %v661_v2 = vmov 0.0   ;;  %vm56_vm0 = vcmask 130048   ;;  %v615_v4 = vld [vmem:[%s864_s3 + $0x38] sm:$0xff]   ;;  %vm662_vm1 = vmmov 0   ;;  %v616_v6 = vld [vmem:[%s864_s3 + $0x30] sm:$0xff]  }
   0x4   :  { %545 = vmatprep.subr.bf16.mxu0 %v661_v2  ;;  %v39_v3 = vld [vmem:[%s861_s0] sm:$0xff]  ;;  %551 = vmatprep.subr.bf16.mxu1 %v661_v2  ;;  %v617_v7 = vld [vmem:[%s864_s3 + $0x28] sm:$0xff]   ;;  %v619_v9 = vld [vmem:[%s864_s3 + $0x18] sm:$0xff]  }
   0x5   :  { %546 = vmatpush3.bf16.msra.mxu0 %v614_v1  ;;  %547 = vmatprep.mubr.msk.bf16.mxu0 %vm662_vm1, %v661_v2  ;;  %v40_v5 = vpack.c.bf16 %v39_v3, %v39_v3  ;;  %v618_v8 = vld [vmem:[%s864_s3 + $0x20] sm:$0xff]   ;;  %v620_v10 = vld [vmem:[%s864_s3 + $0x10] sm:$0xff]  }
   0x6   :  { %552 = vmatpush3.bf16.msra.mxu1 %v615_v4  ;;  %567 = vmatprep.mubr.msk.bf16.mxu1 %vm662_vm1, %v661_v2 }
   0x7   :  { %553 = vmatprep.subr.bf16.mxu1 %v661_v2  ;;  %571 = vmatprep.subr.bf16.mxu0 %v661_v2 }
   0x8   :  { %548 = vmatmul.mubr.msk.bf16.vlgmr.msra.gmra.mxu0 %vm56_vm0, %v40_v5 }
   0x9   :  { %587 = vmatprep.mubr.msk.bf16.mxu0 %vm662_vm1, %v661_v2 }
   0xa   :  { %554 = vmatpush3.bf16.msra.mxu1 %v616_v6 }
   0xb   :  { %555 = vmatprep.subr.bf16.mxu1 %v661_v2 }
   0xe   :  { %556 = vmatpush3.bf16.msra.mxu1 %v617_v7 }
   0xf   :  { %557 = vmatprep.subr.bf16.mxu1 %v661_v2 }
  0x12   :  { %558 = vmatpush3.bf16.msra.mxu1 %v618_v8 }
  0x13   :  { %559 = vmatprep.subr.bf16.mxu1 %v661_v2 }
  0x16   :  { %560 = vmatpush3.bf16.msra.mxu1 %v619_v9 }
  0x17   :  { %19 = vsyncpa [#allocation4], 0  ;;  %561 = vmatprep.subr.bf16.mxu1 %v661_v2  ;;  %v621_v11 = vld [vmem:[%s864_s3 + $0x8] sm:$0xff]   ;;  %v622_v12 = vld [vmem:[%s864_s3] sm:$0xff]   ;;  %vm461_vm2 = vcmask 7168   ;;  %vm439_vm3 = vcmask 64512   ;;  %v437_v58 = vlaneseq }
  0x18   :  { %v623_v13 = vld [vmem:[%s866_s5 + $0x38] sm:$0xff]   ;;  %v625_v14 = vld [vmem:[%s866_s5 + $0x30] sm:$0xff]   ;;  %v627_v15 = vld [vmem:[%s866_s5 + $0x28] sm:$0xff]  }
  0x19   :  { %572 = vmatpush3.bf16.msra.mxu0 %v623_v13  ;;  %v629_v16 = vld [vmem:[%s866_s5 + $0x20] sm:$0xff]   ;;  %v631_v17 = vld [vmem:[%s866_s5 + $0x18] sm:$0xff]   ;;  %v633_v18 = vld [vmem:[%s866_s5 + $0x10] sm:$0xff]   ;;  %v438_v59 = vand.u32 127, %v437_v58 }
  0x1a   :  { %562 = vmatpush3.bf16.msra.mxu1 %v620_v10  ;;  %573 = vmatprep.subr.bf16.mxu0 %v661_v2  ;;  %v486_v19 = vld [vmem:[%s863_s2] ss:$0 sm:$0xff]  ;;  %v624_v25 = vld [vmem:[%s868_s7 + $0x38] sm:$0xff]   ;;  %v626_v28 = vld [vmem:[%s868_s7 + $0x30] sm:$0xff]  }
  0x1b   :  { %563 = vmatprep.subr.bf16.mxu1 %v661_v2  ;;  %v628_v29 = vld [vmem:[%s868_s7 + $0x28] sm:$0xff]   ;;  %v630_v30 = vld [vmem:[%s868_s7 + $0x20] sm:$0xff]   ;;  %v632_v31 = vld [vmem:[%s868_s7 + $0x18] sm:$0xff]  }
  0x1c   :  { %v634_v32 = vld [vmem:[%s868_s7 + $0x10] sm:$0xff]   ;;  %v635_v33 = vld [vmem:[%s866_s5 + $0x8] sm:$0xff]   ;;  %v637_v35 = vld [vmem:[%s866_s5] sm:$0xff]  }
  0x1d   :  { %574 = vmatpush3.bf16.msra.mxu0 %v625_v14  ;;  %v636_v34 = vld [vmem:[%s868_s7 + $0x8] sm:$0xff]   ;;  %v638_v36 = vld [vmem:[%s868_s7] sm:$0xff]  }
  0x1e   :  { %564 = vmatpush3.bf16.msra.mxu1 %v621_v11  ;;  %575 = vmatprep.subr.bf16.mxu0 %v661_v2  ;;  %v489_v37 = vld [vmem:[%s865_s4] ss:$0 sm:$0xff] }
  0x1f   :  { %565 = vmatprep.subr.bf16.mxu1 %v661_v2  ;;  %v498_v45 = vld [vmem:[%s867_s6] ss:$0 sm:$0xff]  ;;  %s663_s6 = smov [#allocation3]  }
  0x20   :  { %v507_v46 = vld [vmem:[#allocation2] ss:$0 sm:$0xff] }
  0x21   :  { %576 = vmatpush3.bf16.msra.mxu0 %v627_v15 }
  0x22   :  { %566 = vmatpush3.bf16.msra.mxu1 %v622_v12  ;;  %577 = vmatprep.subr.bf16.mxu0 %v661_v2 }
  0x23   :  { %591 = vmatprep.subr.bf16.mxu1 %v661_v2 }
  0x25   :  { %578 = vmatpush3.bf16.msra.mxu0 %v629_v16 }
  0x26   :  { %579 = vmatprep.subr.bf16.mxu0 %v661_v2 }
  0x29   :  { %580 = vmatpush3.bf16.msra.mxu0 %v631_v17 }
  0x2a   :  { %581 = vmatprep.subr.bf16.mxu0 %v661_v2 }
  0x2d   :  { %582 = vmatpush3.bf16.msra.mxu0 %v633_v18 }
  0x2e   :  { %583 = vmatprep.subr.bf16.mxu0 %v661_v2 }
  0x31   :  { %584 = vmatpush3.bf16.msra.mxu0 %v635_v33 }
  0x32   :  { %585 = vmatprep.subr.bf16.mxu0 %v661_v2 }
  0x35   :  { %586 = vmatpush3.bf16.msra.mxu0 %v637_v35 }
  0xc8   :  { %v94_v20 = vpop.f32.mrf.mxu0 }
  0xc9   :  { %v95_v21 = vadd.f32 %v486_v19, %v94_v20 }
  0xca   :  { %v549_v22 = vpop.f32.mrf.mxu0 }
  0xcb   :  { %v100_v23 = vmax.f32 %v95_v21, 0.0 }
  0xcc   :  { %v97_v24 = vpop.f32.mrf.mxu0 }
  0xcd   :  { %v101_v26 = vpack.c.bf16 %v100_v23, %v100_v23 }
  0xce   :  { %v550_v27 = vpop.f32.mrf.mxu0 }
  0xcf   :  { %568 = vmatmul.mubr.bf16.vlgmr.msra.gmra.mxu1 %v101_v26 }
  0xd0   :  { %592 = vmatpush3.bf16.msra.mxu1 %v624_v25  ;;  %607 = vmatprep.mubr.msk.bf16.mxu1 %vm662_vm1, %v661_v2 }
  0xd1   :  { %593 = vmatprep.subr.bf16.mxu1 %v661_v2 }
  0xd4   :  { %594 = vmatpush3.bf16.msra.mxu1 %v626_v28 }
  0xd5   :  { %595 = vmatprep.subr.bf16.mxu1 %v661_v2 }
  0xd8   :  { %596 = vmatpush3.bf16.msra.mxu1 %v628_v29 }
  0xd9   :  { %597 = vmatprep.subr.bf16.mxu1 %v661_v2 }
  0xdc   :  { %598 = vmatpush3.bf16.msra.mxu1 %v630_v30 }
  0xdd   :  { %599 = vmatprep.subr.bf16.mxu1 %v661_v2 }
  0xe0   :  { %600 = vmatpush3.bf16.msra.mxu1 %v632_v31 }
  0xe1   :  { %601 = vmatprep.subr.bf16.mxu1 %v661_v2 }
  0xe4   :  { %602 = vmatpush3.bf16.msra.mxu1 %v634_v32 }
  0xe5   :  { %603 = vmatprep.subr.bf16.mxu1 %v661_v2 }
  0xe8   :  { %604 = vmatpush3.bf16.msra.mxu1 %v636_v34 }
  0xe9   :  { %605 = vmatprep.subr.bf16.mxu1 %v661_v2 }
  0xec   :  { %606 = vmatpush3.bf16.msra.mxu1 %v638_v36 }
 0x18f   :  { %v207_v38 = vpop.f32.mrf.mxu1 }
 0x190   :  { %v208_v39 = vadd.f32 %v489_v37, %v207_v38 }
 0x191   :  { %v569_v40 = vpop.f32.mrf.mxu1 }
 0x192   :  { %v213_v41 = vmax.f32 %v208_v39, 0.0 }
 0x193   :  { %v210_v42 = vpop.f32.mrf.mxu1 }
 0x194   :  { %v214_v43 = vpack.c.bf16 %v213_v41, %v213_v41 }
 0x195   :  { %v570_v44 = vpop.f32.mrf.mxu1 }
 0x196   :  { %588 = vmatmul.mubr.bf16.vlgmr.msra.gmra.mxu0 %v214_v43  ;;  %608 = vmatmul.mubr.bf16.vlgmr.msra.gmra.mxu1 %v214_v43 }
 0x256   :  { %v320_v47 = vpop.f32.mrf.mxu0  ;;  %v431_v48 = vpop.f32.mrf.mxu1 }
 0x257   :  { %v321_v49 = vadd.f32 %v498_v45, %v320_v47  ;;  %v432_v50 = vadd.f32 %v507_v46, %v431_v48 }
 0x258   :  { %v589_v51 = vpop.f32.mrf.mxu0  ;;  %v609_v52 = vpop.f32.mrf.mxu1 }
 0x259   :  { %462 = vst.msk [vmem:[%s871_s10] sm:$0xff] %vm461_vm2, %v432_v50  ;;  %v440_v53 = vsel %vm439_vm3, %v321_v49, -inf  ;;  %s470_s10 = sshll.u32 %s663_s6, 4  ;;  %s471_s10 = int_to_ptr.vmem [resolvable:$true] %s470_s10 }
 0x25a   :  { %460 = vst.msk [vmem:[#allocation3] sm:$0xff] %vm439_vm3, %v321_v49  ;;  %v434_v54 = vpop.f32.mrf.mxu1  ;;  %441 = vmax.xlane.f32.xlu0 %v440_v53  ;;  %v323_v55 = vpop.f32.mrf.mxu0  ;;  %s639_s26 = scalar_lea.vmem %s471_s10, 128  ;;  %p644_p1 = scmp.lt.s32.totalorder %s471_s10, %s471_s10 }
 0x25b   :  { %p640_p0 = scmp.ne.s32.totalorder %s471_s10, %s639_s26  ;;  %p645_p2 = scmp.lt.s32.totalorder %s639_s26, %s639_s26 }
 0x25c   :  { %v590_v56 = vpop.f32.mrf.mxu0  ;;  %v610_v57 = vpop.f32.mrf.mxu1 }
 0x25d   :  { %p646_p3 = por %p645_p2, %p644_p1 }
 0x25f   :  { %p647_p4 = pnand %p646_p3, %p640_p0 }
 0x2e3   :  { %v442_v60 = vpop.xlane.xlu0 %441 }
 0x2e4   :  { %vm443_vm4 = vcmp.eq.f32.partialorder %v321_v49, %v442_v60 }
 0x2e5   :  { %v444_v61 = vsel %vm443_vm4, %v438_v59, 8 }
 0x2e6   :  { %v445_v62 = vsel %vm439_vm3, %v444_v61, 2147483647 }
 0x2e7   :  { %v447_v63 = vshra.s32 %v445_v62, 16  ;;  %v446_v1 = vand.u32 65535, %v445_v62 }
 0x2e9   :  { %v449_v0 = vcvt.s32.f32 %v447_v63  ;;  %v448_v3 = vcvt.s32.f32 %v446_v1 }
 0x2eb   :  { %450 = vmin.xlane.f32.xlu0 %v449_v0 }
 0x374   :  { %v451_v2 = vpop.xlane.xlu0 %450 }
 0x375   :  { %vm452_vm5 = vcmp.eq.f32.partialorder %v449_v0, %v451_v2 }
 0x376   :  { %v453_v4 = vsel %vm452_vm5, %v448_v3, inf }
 0x377   :  { %454 = vmin.xlane.f32.xlu1 %v453_v4 }
 0x378   :  { %650 = shalt.err (!%p647_p4)
}
 0x379   :  { %473 = dma.vmem_to_hbm [thread:$0]  %s471_s10, 128, %s870_s9, [#allocation4]   ;;  %v457_v5 = vcvt.f32.s32 %v451_v2 }
 0x37b   :  { %v458_v7 = vshll.u32 %v457_v5, 16 }
 0x400   :  { %v455_v6 = vpop.xlane.xlu1 %454 }
 0x401   :  { %v456_v8 = vcvt.f32.s32 %v455_v6 }
 0x403   :  { %v459_v9 = vadd.s32 %v458_v7, %v456_v8 }
 0x405   :  { %463 = vst.msk [vmem:[%s872_s11] sm:$0xff] %vm461_vm2, %v459_v9 }
 0x406   :  { %659 = dma.done.wait [#allocation4], 128  }
 0x407   :  { %660 = vsyncadd [#allocation4], 4294967168 }
 0x408   :  { %485 = vsyncpa [#allocation4], 1 }

</bundles_post_ra>
